<compile_context>
chip_gen: v7x
topology: tpu7x:2x2x1
jax: 0.10.0
libtpu: 0.0.40
codegen_flags: <defaults>
</compile_context>

<pallas_src>
import functools

import jax
import jax.numpy as jnp
from jax.experimental import pallas as pl
from jax.experimental.pallas import tpu as pltpu


def _pooling_kernel(x_ref, o_ref, *, pool_size: int):
    """x_ref/o_ref: (bc_blk, H, W) block of the fused (N*C, H, W) tensor."""
    r = pool_size // 2
    b, H, W = x_ref.shape

    # Single load of the block; all math in f32 values (no scratch stores).
    x = x_ref[...].astype(jnp.float32)  # (b, H, W)

    # Banded averaging matrices (divisor folded in), built from iota:
    #   A[h, k] = [|h - k| <= r] / ch(h)   with ch(h) = #valid taps along H
    #   B[k, w] = [|k - w| <= r] / cw(w)   with cw(w) = #valid taps along W
    # Then  avg = A @ x @ B  reproduces AvgPool2d(stride=1, pad=r,
    # count_include_pad=False) exactly, including edge clipping.
    hh = jax.lax.broadcasted_iota(jnp.int32, (H, H), 0)  # output row h
    hk = jax.lax.broadcasted_iota(jnp.int32, (H, H), 1)  # input row  k
    ch = jnp.minimum(hh, r) + jnp.minimum((H - 1) - hh, r) + 1
    A = jnp.where(jnp.abs(hh - hk) <= r, 1.0 / ch.astype(jnp.float32), 0.0)

    wk = jax.lax.broadcasted_iota(jnp.int32, (W, W), 0)  # input col  k
    ww = jax.lax.broadcasted_iota(jnp.int32, (W, W), 1)  # output col w
    cw = jnp.minimum(ww, r) + jnp.minimum((W - 1) - ww, r) + 1
    B = jnp.where(jnp.abs(wk - ww) <= r, 1.0 / cw.astype(jnp.float32), 0.0)

    # Batched MXU matmuls (same 'bqk,bkd->bqd' structure as flash attention).
    Ab = jnp.broadcast_to(A, (b, H, H))
    Bb = jnp.broadcast_to(B, (b, W, W))
    col = jnp.einsum('bhk,bkw->bhw', Ab, x, preferred_element_type=jnp.float32)
    avg = jnp.einsum('bhk,bkw->bhw', col, Bb, preferred_element_type=jnp.float32)

    # avg_pool(x) - x, single store.
    o_ref[...] = (avg - x).astype(o_ref.dtype)


def _round_up(x: int, m: int) -> int:
    return ((x + m - 1) // m) * m


def _pick_bc_block(bc_total: int, H: int, W: int, itemsize: int,
                   vmem_budget: int = 20 * 1024 * 1024) -> int:
    """Largest divisor of N*C whose per-step VMEM footprint fits the budget,
    while keeping at least 2 grid steps (v7x has 2 TensorCores)."""
    pad_h = _round_up(H, 8)
    pad_w = _round_up(W, 128)
    pad_a = pad_h * _round_up(H, 128)       # broadcast A row (f32, padded)
    pad_b = _round_up(W, 8) * pad_w         # broadcast B row (f32, padded)
    per_row = (4 * pad_h * pad_w * itemsize         # double-buffered in + out blocks
               + 4 * (3 * pad_h * pad_w)            # x_f32 / col / avg values
               + 4 * (pad_a + pad_b))               # broadcast band matrices
    best = 1
    for d in range(1, bc_total + 1):
        if bc_total % d == 0 and d * per_row <= vmem_budget:
            best = d
    if best == bc_total and bc_total > 1:
        # Force >= 2 grid steps so the parallel axis can shard across cores.
        best = max(d for d in range(1, bc_total) if bc_total % d == 0)
    return best


def pooling_forward(x: jax.Array, pool_size: int = 3) -> jax.Array:
    """PoolFormer Pooling: avg_pool(x) - x, NCHW input/output (PyTorch layout)."""
    assert x.ndim == 4, "expected NCHW input"
    # Even pool_size with padding=pool_size//2 changes the spatial size in the
    # PyTorch module (pool(x) - x would not broadcast), so only odd is valid.
    assert pool_size % 2 == 1, "pool_size must be odd (PoolFormer default is 3)"

    N, C, H, W = x.shape
    bc = N * C
    itemsize = jnp.dtype(x.dtype).itemsize
    bc_blk = _pick_bc_block(bc, H, W, itemsize)
    grid = (bc // bc_blk,)

    # Free, contiguous leading-dim reshape (no HBM traffic, unlike a transpose).
    x3 = x.reshape(bc, H, W)

    kernel = functools.partial(_pooling_kernel, pool_size=pool_size)
    out3 = pl.pallas_call(
        kernel,
        out_shape=jax.ShapeDtypeStruct((bc, H, W), x.dtype),
        grid=grid,
        in_specs=[pl.BlockSpec((bc_blk, H, W), lambda i: (i, 0, 0))],
        out_specs=pl.BlockSpec((bc_blk, H, W), lambda i: (i, 0, 0)),
        compiler_params=pltpu.CompilerParams(
            dimension_semantics=("parallel",),
            vmem_limit_bytes=48 * 1024 * 1024,
        ),
        cost_estimate=pl.CostEstimate(
            flops=2 * bc * H * W * (H + W),
            transcendentals=0,
            bytes_accessed=2 * bc * H * W * itemsize,
        ),
    )(x3)

    return out3.reshape(N, C, H, W)


def _reference(x: jax.Array, pool_size: int = 3) -> jax.Array:
    """Pure-JAX reference (AvgPool2d, stride=1, pad=k//2, count_include_pad=False)."""
    r = pool_size // 2
    H, W = x.shape[2], x.shape[3]
    xf = x.astype(jnp.float32)
    xp = jnp.pad(xf, ((0, 0), (0, 0), (r, r), (r, r)))
    cp = jnp.pad(jnp.ones_like(xf), ((0, 0), (0, 0), (r, r), (r, r)))
    acc = jnp.zeros_like(xf)
    cnt = jnp.zeros_like(xf)
    for dy in range(pool_size):
        for dx in range(pool_size):
            acc = acc + xp[:, :, dy:dy + H, dx:dx + W]
            cnt = cnt + cp[:, :, dy:dy + H, dx:dx + W]
    return (acc / cnt - xf).astype(x.dtype)


if __name__ == "__main__":
    key = jax.random.PRNGKey(0)
    k1, k2, k3 = jax.random.split(key, 3)

    # 1) Primary small check (NCHW, f32, default pool_size=3).
    x1 = jax.random.normal(k1, (2, 4, 16, 16), dtype=jnp.float32)
    out1 = jax.block_until_ready(pooling_forward(x1, pool_size=3))
    ref1 = _reference(x1, pool_size=3)
    assert out1.shape == x1.shape
    assert jnp.allclose(out1, ref1, atol=1e-5, rtol=1e-5)

    # 2) bf16 input, non-square and non-8/128-aligned spatial dims.
    x2 = jax.random.normal(k2, (1, 3, 12, 20), dtype=jnp.float32).astype(jnp.bfloat16)
    out2 = jax.block_until_ready(pooling_forward(x2, pool_size=3))
    ref2 = _reference(x2, pool_size=3)
    assert out2.shape == x2.shape
    assert jnp.allclose(out2.astype(jnp.float32), ref2.astype(jnp.float32),
                        atol=2e-2, rtol=2e-2)

    # 3) Larger pool size on a tiny (late-stage-like) feature map, odd channels.
    x3 = jax.random.normal(k3, (2, 5, 7, 9), dtype=jnp.float32)
    out3 = jax.block_until_ready(pooling_forward(x3, pool_size=5))
    ref3 = _reference(x3, pool_size=5)
    assert out3.shape == x3.shape
    assert jnp.allclose(out3, ref3, atol=1e-5, rtol=1e-5)

    print("KERNEL_OK")
</pallas_src>

<mosaic_0001>
module attributes {stable_mosaic.version = 11 : i64} {
  func.func @_pooling_kernel(%arg0: i32, %arg1: memref<4x16x16xf32, #tpu.memory_space<vmem>>, %arg2: memref<4x16x16xf32, #tpu.memory_space<vmem>>) attributes {dimension_semantics = [#tpu.dimension_semantics<parallel>], iteration_bounds = array<i64: 2>, scalar_prefetch = 0 : i64, scratch_operands = 0 : i64, tpu.core_type = #tpu.core_type<tc>, window_params = [{transform_indices = @transform_0, window_bounds = array<i64: 4, 16, 16>}, {transform_indices = @transform_1, window_bounds = array<i64: 4, 16, 16>}]} {
    %c0 = arith.constant 0 : index
    %c0_0 = arith.constant 0 : index
    %c0_1 = arith.constant 0 : index
    %0 = vector.load %arg1[%c0, %c0_0, %c0_1] : memref<4x16x16xf32, #tpu.memory_space<vmem>>, vector<4x16x16xf32>
    %1 = tpu.iota {dimensions = array<i32: 0>} : vector<16x16xi32>
    %2 = tpu.iota {dimensions = array<i32: 1>} : vector<16x16xi32>
    %c1_i32 = arith.constant 1 : i32
    %3 = vector.broadcast %c1_i32 : i32 to vector<16x16xi32>
    %4 = arith.minsi %1, %3 : vector<16x16xi32>
    %c15_i32 = arith.constant 15 : i32
    %5 = vector.broadcast %c15_i32 : i32 to vector<16x16xi32>
    %6 = arith.subi %5, %1 : vector<16x16xi32>
    %c1_i32_2 = arith.constant 1 : i32
    %7 = vector.broadcast %c1_i32_2 : i32 to vector<16x16xi32>
    %8 = arith.minsi %6, %7 : vector<16x16xi32>
    %9 = arith.addi %4, %8 : vector<16x16xi32>
    %c1_i32_3 = arith.constant 1 : i32
    %10 = vector.broadcast %c1_i32_3 : i32 to vector<16x16xi32>
    %11 = arith.addi %9, %10 : vector<16x16xi32>
    %12 = arith.subi %1, %2 : vector<16x16xi32>
    %13 = math.absi %12 : vector<16x16xi32>
    %c1_i32_4 = arith.constant 1 : i32
    %14 = vector.broadcast %c1_i32_4 : i32 to vector<16x16xi32>
    %15 = arith.cmpi sle, %13, %14 : vector<16x16xi32>
    %16 = arith.sitofp %11 : vector<16x16xi32> to vector<16x16xf32>
    %cst = arith.constant 1.000000e+00 : f32
    %17 = vector.broadcast %cst : f32 to vector<16x16xf32>
    %18 = arith.divf %17, %16 : vector<16x16xf32>
    %cst_5 = arith.constant 0.000000e+00 : f32
    %19 = vector.broadcast %cst_5 : f32 to vector<16x16xf32>
    %20 = arith.select %15, %18, %19 : vector<16x16xi1>, vector<16x16xf32>
    %21 = tpu.iota {dimensions = array<i32: 0>} : vector<16x16xi32>
    %22 = tpu.iota {dimensions = array<i32: 1>} : vector<16x16xi32>
    %c1_i32_6 = arith.constant 1 : i32
    %23 = vector.broadcast %c1_i32_6 : i32 to vector<16x16xi32>
    %24 = arith.minsi %22, %23 : vector<16x16xi32>
    %c15_i32_7 = arith.constant 15 : i32
    %25 = vector.broadcast %c15_i32_7 : i32 to vector<16x16xi32>
    %26 = arith.subi %25, %22 : vector<16x16xi32>
    %c1_i32_8 = arith.constant 1 : i32
    %27 = vector.broadcast %c1_i32_8 : i32 to vector<16x16xi32>
    %28 = arith.minsi %26, %27 : vector<16x16xi32>
    %29 = arith.addi %24, %28 : vector<16x16xi32>
    %c1_i32_9 = arith.constant 1 : i32
    %30 = vector.broadcast %c1_i32_9 : i32 to vector<16x16xi32>
    %31 = arith.addi %29, %30 : vector<16x16xi32>
    %32 = arith.subi %21, %22 : vector<16x16xi32>
    %33 = math.absi %32 : vector<16x16xi32>
    %c1_i32_10 = arith.constant 1 : i32
    %34 = vector.broadcast %c1_i32_10 : i32 to vector<16x16xi32>
    %35 = arith.cmpi sle, %33, %34 : vector<16x16xi32>
    %36 = arith.sitofp %31 : vector<16x16xi32> to vector<16x16xf32>
    %cst_11 = arith.constant 1.000000e+00 : f32
    %37 = vector.broadcast %cst_11 : f32 to vector<16x16xf32>
    %38 = arith.divf %37, %36 : vector<16x16xf32>
    %cst_12 = arith.constant 0.000000e+00 : f32
    %39 = vector.broadcast %cst_12 : f32 to vector<16x16xf32>
    %40 = arith.select %35, %38, %39 : vector<16x16xi1>, vector<16x16xf32>
    %41 = vector.shape_cast %20 : vector<16x16xf32> to vector<1x16x16xf32>
    %42 = vector.broadcast %41 : vector<1x16x16xf32> to vector<4x16x16xf32>
    %43 = vector.shape_cast %40 : vector<16x16xf32> to vector<1x16x16xf32>
    %44 = vector.broadcast %43 : vector<1x16x16xf32> to vector<4x16x16xf32>
    "tpu.trace_start"() <{level = 10 : i32, message = "bhk,bkw->bhw"}> : () -> ()
    %cst_13 = arith.constant dense<0.000000e+00> : vector<4x16x16xf32>
    %45 = tpu.matmul %42, %0, %cst_13 {dimension_numbers = #tpu.dot_dimension_numbers<[2], [1], [1], [2], [0, 0, 0, 1, 1, 2], [0], [0]>} : vector<4x16x16xf32>, vector<4x16x16xf32>, vector<4x16x16xf32> -> vector<4x16x16xf32>
    %cst_14 = arith.constant dense<0.000000e+00> : vector<4x16x16xf32>
    %46 = tpu.matmul %45, %44, %cst_14 {dimension_numbers = #tpu.dot_dimension_numbers<[2], [1], [1], [2], [0, 0, 0, 1, 1, 2], [0], [0]>} : vector<4x16x16xf32>, vector<4x16x16xf32>, vector<4x16x16xf32> -> vector<4x16x16xf32>
    "tpu.trace_stop"() : () -> ()
    %47 = arith.subf %46, %0 : vector<4x16x16xf32>
    %c0_15 = arith.constant 0 : index
    %c0_16 = arith.constant 0 : index
    %c0_17 = arith.constant 0 : index
    %48 = vector.load %arg2[%c0_15, %c0_16, %c0_17] : memref<4x16x16xf32, #tpu.memory_space<vmem>>, vector<4x16x16xf32>
    tpu.vector_store %arg2[%c0_15, %c0_16, %c0_17], %47 {strides = array<i32>} : memref<4x16x16xf32, #tpu.memory_space<vmem>>, vector<4x16x16xf32>,
    return
  }
  func.func @transform_0(%arg0: i32) -> (i32, i32, i32) {
    %c0_i32 = arith.constant 0 : i32
    %c0_i32_0 = arith.constant 0 : i32
    %c0_i32_1 = arith.constant 0 : i32
    return %arg0, %c0_i32, %c0_i32_0 : i32, i32, i32
  }
  func.func @transform_1(%arg0: i32) -> (i32, i32, i32) {
    %c0_i32 = arith.constant 0 : i32
    %c0_i32_0 = arith.constant 0 : i32
    %c0_i32_1 = arith.constant 0 : i32
    return %arg0, %c0_i32, %c0_i32_0 : i32, i32, i32
  }
}

</mosaic_0001>

<bundles_post_ra>
// kernel: tpu_custom_call.1
= control target key start
LH: loop header
LB: loop body
LE: loop exit
PB: predicated region body
PF: predicated region fallthrough
CT: control target
= control target key end

     0   :  { %6 = vsyncpa [#allocation3], 0  ;;  %s1516_s0 = inlined_call_operand.hbm [shape: f32[8,16,16], index: 0, kind: input, shape index: {}]   ;;  %s1517_s1 = inlined_call_operand.hbm [shape: f32[8,16,16], index: 1, kind: output, shape index: {}]  }
   0x1   :  { %8 = vsyncpa [#allocation3 + $0x1], 0 }
   0x2   :  { %9 = vsyncpa [#allocation4], 0 }
   0x3   :  { %11 = vsyncpa [#allocation4 + $0x1], 0  ;;  %s1274_s6 = smov 0   ;;  %s1276_s7 = smov 0  }
   0x4   :  { %s1278_s8 = smov 0   ;;  %s1280_s9 = smov 0  }
   0x5 LB: > { %s1295_s10 = sadd.s32 4294967295, %s1256_s9   ;;  %s930_s11 = sadd.s32 4294967294, %s1256_s9   ;;  %s1256_s9 = sphi %s1280_s9, %s1532_s9   ;;  %s1252_s8 = sphi %s1278_s8, %s1531_s8   ;;  %s1248_s7 = sphi %s1276_s7, %s1530_s7   ;;  %s1244_s6 = sphi %s1274_s6, %s1529_s6  }
   0x6   : > { %s1299_s12 = sadd.s32 1, %s1256_s9   ;;  %s24_s13 = sadd.s32 1, %s1252_s8 }
   0x7   : > { %s21_s14 = ssub.s32 %s1256_s9, %s1299_s12  ;;  %p31_p0 = scmp.ne.s32.totalorder %s1252_s8, %s1248_s7 }
   0x8   : > { %p22_p1 = scmp.eq.s32.totalorder %s21_s14, 0  ;;  %p32_p2 = scmp.eq.s32.totalorder %s1256_s9, 0 }
   0x9   : > { %p37_p3 = scmp.ne.s32.totalorder %s1248_s7, %s1244_s6  ;;  %p38_p4 = scmp.eq.s32.totalorder %s1295_s10, 0 }
   0xa   : > { %s1311_s15 = scalar_select %p22_p1, %s1252_s8, %s24_s13  }
   0xb   : > { %p1313_p5 = por %p32_p2, %p31_p0  ;;  %p1317_p6 = por %p38_p4, %p37_p3 }
   0xc   : > { %p61_p7 = scmp.eq.s32.totalorder %s1295_s10, 1  ;;  %p67_p8 = scmp.eq.s32.totalorder %s930_s11, 1 }
   0xd   : > { %p1116_p10 = scmp.lt.s32.totalorder %s1256_s9, 2  ;;  %s87_s20 = sand.u32 1, %s1252_s8  }
   0xe   : > { %p1324_p11 = por %p61_p7, %p31_p0  ;;  %p1328_p12 = por %p67_p8, %p37_p3 }
   0xf   : > { %s973_s21 = sshll.u32 %s1256_s9, 10  ;;  %s933_s22 = sshll.u32 %s87_s20, 6 }
  0x10   : > { %s1521_s18 = scalar_select %p1324_p11, 1, 0 }
  0x11   : > { %s1522_s19 = scalar_select %p1328_p12, 1, 0 }
  0x12   : > { %s1337_s25 = scalar_lea.hbm %s1516_s0, %s973_s21  ;;  %s91_s26 = scalar_lea.vmem [#allocation2], %s933_s22 }
  0x13   : > { %s99_s27 = sshll.u32 %s91_s26, 4  ;;  %p1341_p13 = pnand %p1116_p10, %p1313_p5  ;;  %s1345_s27 = int_to_ptr.vmem [resolvable:$true] %s99_s27 }
  0x14   : > { %s1347_s29 = scalar_lea.sflag [#allocation3], %s87_s20  ;;  %s1160_s30 = scalar_lea.hbm %s1337_s25, 1024 }
  0x15   : > { %p1161_p0 = scmp.ne.s32.totalorder %s1337_s25, %s1160_s30  ;;  %p1162_p1 = pneg %p1341_p13 }
  0x16   : > { %s1165_s4 = scalar_lea.hbm %s1516_s0, 2048  ;;  %p1166_p4 = scmp.lt.u32.totalorder %s1337_s25, %s1516_s0 }
  0x17   : > { %p1163_p2 = pnand %p1162_p1, %p1161_p0  ;;  %p1167_p5 = scmp.lt.u32.totalorder %s1165_s4, %s1160_s30 }
  0x18   : > { %p1169_p8 = scmp.lt.u32.totalorder %s1160_s30, %s1337_s25 }
  0x19   : > { %p1164_p3 = pneg %p1163_p2  ;;  %p1168_p7 = por %p1167_p5, %p1166_p4 }
  0x1b   : > { %p1170_p10 = por %p1169_p8, %p1168_p7 }
  0x1d   : > { %p1171_p9 = pnand %p1170_p10, %p1164_p3 }
  0x1f   : > { %1174 = shalt.err (!%p1171_p9)
}
  0x20   : > { %s1175_s13 = scalar_lea.vmem %s1345_s27, 1024  ;;  %s1258_s14 = smov [#allocation2]  }
  0x21   : > { %p1176_p0 = scmp.ne.s32.totalorder %s1345_s27, %s1175_s13  ;;  %s1180_s16 = sshll.u32 %s1258_s14, 4  ;;  %s1181_s16 = int_to_ptr.vmem [resolvable:$false] %s1180_s16 }
  0x22   : > { %s1182_s20 = scalar_lea.vmem %s1181_s16, 2048  ;;  %p1183_p11 = scmp.lt.s32.totalorder %s1345_s27, %s1181_s16 }
  0x23   : > { %p1178_p2 = pnand %p1176_p0, %p1162_p1  ;;  %p1184_p4 = scmp.lt.s32.totalorder %s1182_s20, %s1175_s13 }
  0x25   : > { %p1179_p12 = pneg %p1178_p2  ;;  %p1185_p5 = por %p1184_p4, %p1183_p11 }
  0x27   : > { %p1186_p7 = pnand %p1185_p5, %p1179_p12 }
  0x29   : > { %1189 = shalt.err (!%p1186_p7)
}
  0x2a   : > { %s1259_s21 = smov 128   ;;  %s1260_s22 = smov 8  }
  0x2b   : > { %1111 = dma.hbm_to_vmem [thread:$0]  (!%p1341_p13), %s1337_s25, 1024, %s1345_s27, %s1347_s29, %s1259_s21, %s1259_s21, %s1260_s22  }
  0x2c   : > { %p937_p9 = scmp.ge.s32.totalorder %s1256_s9, 1  ;;  %p107_p1 = scmp.lt.s32.totalorder %s1256_s9, 3 }
  0x2e   : > { %p108_p3 = pnand %p937_p9, %p107_p1 }
  0x2f   : > { %s1378_s23 = sand.u32 (!%p108_p3), 1, %s1248_s7  }
  0x30   : > { %111 = sbr.rel (%p108_p3) target bundleno = 532 (0x214), region = 24  ;;  %s938_s24 = sshll.u32 (!%p108_p3), %s1378_s23, 6 }
  0x31   : > { %s114_s26 = scalar_lea.sflag (!%p108_p3), [#allocation3], %s1378_s23  ;;  %s117_s30 = scalar_lea.vmem (!%p108_p3), [#allocation2], %s938_s24 }
  0x37   : > { %1235 = dma.done.wait (%p1317_p6), %s114_s26, 1024  }
  0x38   : > { %1237 = vsyncadd (%p1317_p6), %s114_s26, 4294966272  ;;  %v146_v0 = vlaneseq  ;;  %v1388_v8 = vld [vmem:[%s117_s30] sm:$0xff]  ;;  %v1390_v9 = vld [vmem:[%s117_s30 + $0x8] sm:$0xff]  ;;  %vm195_vm5 = vcmask 130048   ;;  %s975_s17 = sshll.u32 %s1295_s10, 10  ;;  %s135_s25 = scalar_lea.vmem [#allocation5], %s938_s24 }
  0x39   : > { %v1392_v10 = vld [vmem:[%s117_s30 + $0x10] sm:$0xff]  ;;  %v1064_v13 = vpack.c.bf16 %v1390_v9, %v1388_v8  ;;  %v1396_v14 = vld [vmem:[%s117_s30 + $0x18] sm:$0xff]  ;;  %v1398_v18 = vld [vmem:[%s117_s30 + $0x20] sm:$0xff]  ;;  %s857_s27 = sshll.u32 %s135_s25, 4  ;;  %s1464_s29 = scalar_lea.hbm %s1517_s1, %s975_s17  ;;  %s1466_s27 = int_to_ptr.vmem [resolvable:$true] %s857_s27 }
  0x3a   : > { %v147_v1 = vshrl.u32 %v146_v0, 7  ;;  %v150_v2 = vand.u32 127, %v146_v0  ;;  %v1400_v19 = vld [vmem:[%s117_s30 + $0x28] sm:$0xff]  ;;  %v1068_v20 = vpack.c.bf16 %v1396_v14, %v1392_v10  ;;  %v1406_v22 = vld [vmem:[%s117_s30 + $0x30] sm:$0xff]  ;;  %v1408_v23 = vld [vmem:[%s117_s30 + $0x38] sm:$0xff]  ;;  %s843_s2 = scalar_lea.sflag [#allocation4], %s1378_s23 }
  0x3b   : > { %v1072_v21 = vpack.c.bf16 %v1400_v19, %v1398_v18  ;;  %1065 = vmatprep.subr.bf16.mxu0 %v1064_v13  ;;  %v1076_v26 = vpack.c.bf16 %v1408_v23, %v1406_v22  ;;  %s1190_s3 = scalar_lea.vmem %s1466_s27, 1024  ;;  %p1526_p11 = scmp.ne.s32.totalorder %s1521_s18, 0 }
  0x3c   : > { %vm151_vm0 = vcmp.lt.s32.totalorder %v147_v1, 1  ;;  %vm183_vm1 = vcmp.lt.s32.totalorder %v150_v2, 1  ;;  %v185_v3 = vsub.s32 15, %v150_v2  ;;  %v148_v6 = vadd.s32 8, %v147_v1  ;;  %1069 = vmatprep.subr.bf16.mxu1 %v1068_v20  ;;  %1067 = vmatpush3.bf16.msra.mxu0 %v1064_v13  ;;  %p1191_p6 = scmp.ne.s32.totalorder %s1466_s27, %s1190_s3  ;;  %s1261_s4 = smov [#allocation5]  }
  0x3d   : > { %v152_v4 = vsel %vm151_vm0, %v147_v1, 1  ;;  %v184_v5 = vsel %vm183_vm1, %v150_v2, 1  ;;  %v165_v16 = vsub.s32 %v147_v1, %v150_v2  ;;  %1071 = vmatpush3.bf16.msra.mxu1 %v1068_v20  ;;  %1073 = vmatprep.subr.bf16.mxu0 %v1072_v21  ;;  %s1194_s5 = sshll.u32 %s1261_s4, 4  ;;  %s1195_s5 = int_to_ptr.vmem [resolvable:$false] %s1194_s5 }
  0x3e   : > { %v161_v7 = vadd.s32 1, %v152_v4  ;;  %vm186_vm2 = vcmp.lt.s32.totalorder %v185_v3, 1  ;;  %v156_v12 = vsub.s32 15, %v148_v6  ;;  %1077 = vmatprep.subr.bf16.mxu1 %v1076_v26  ;;  %v166_v32 = vsub.s32 %v148_v6, %v150_v2  ;;  %p1192_p12 = pnand %p1191_p6, %p1526_p11  ;;  %s1196_s11 = scalar_lea.vmem %s1195_s5, 2048 }
  0x3f   : > { %v187_v11 = vsel %vm186_vm2, %v185_v3, 1  ;;  %v168_v28 = vsub.s32 0, %v165_v16  ;;  %p1197_p8 = scmp.lt.s32.totalorder %s1466_s27, %s1195_s5  ;;  %p1198_p10 = scmp.lt.s32.totalorder %s1196_s11, %s1190_s3 }
  0x40   : > { %v163_v15 = vadd.s32 1, %v161_v7  ;;  %v188_v17 = vadd.s32 %v187_v11, %v184_v5  ;;  %vm159_vm3 = vcmp.lt.s32.totalorder %v156_v12, 1  ;;  %v171_v35 = vsub.s32 0, %v166_v32  ;;  %p1193_p13 = pneg %p1192_p12 }
  0x41   : > { %v160_v27 = vsel %vm159_vm3, %v156_v12, 1  ;;  %v940_v33 = vmin.u32 %v168_v28, %v165_v16  ;;  %p1199_p0 = por %p1198_p10, %p1197_p8 }
  0x42   : > { %v175_v24 = vcvt.s32.f32 %v163_v15  ;;  %v189_v25 = vadd.s32 1, %v188_v17  ;;  %v162_v30 = vadd.s32 1, %v160_v27  ;;  %v941_v37 = vmin.u32 %v171_v35, %v166_v32 }
  0x43   : > { %vm173_vm4 = vcmp.le.s32.totalorder %v940_v33, 1  ;;  %p1200_p2 = pnand %p1199_p0, %p1193_p13 }
  0x44   : > { %1154 = vrcp.f32 %v175_v24  ;;  %v190_v29 = vcvt.s32.f32 %v189_v25  ;;  %v164_v31 = vadd.s32 1, %v162_v30  ;;  %vm174_vm6 = vcmp.le.s32.totalorder %v941_v37, 1 }
  0x45   : > { %vm1415_vm7 = vmpackc.low %vm174_vm6, %vm173_vm4 }
  0x46   : > { %1156 = vrcp.f32 %v190_v29  ;;  %v176_v34 = vcvt.s32.f32 %v164_v31 }
  0x48   : > { %1158 = vrcp.f32 %v176_v34 }
  0x4e   : > { %v1155_v36 = vpop.eup %1154 }
  0x4f   : > { %v181_v38 = vsel %vm173_vm4, %v1155_v36, 0.0 }
  0x50   : > { %1012 = vmatprep.mubr.msk.f32.mxu0 %vm195_vm5, %v181_v38  ;;  %1019 = vmatprep.mubr.msk.f32.mxu1 %vm195_vm5, %v181_v38  ;;  %v1157_v39 = vpop.eup %1156 }
  0x51   : > { %v1080_v42 = vpack.c.bf16 %v1157_v39, %v1157_v39 }
  0x52   : > { %v1159_v40 = vpop.eup %1158 }
  0x53   : > { %v182_v41 = vsel %vm174_vm6, %v1159_v40, 0.0 }
  0x54   : > { %1013 = vmatmul.mubr.msk.f32.vlgmr.msra.gmra.mrb[0].mxu0 %vm195_vm5, %v182_v41  ;;  %1020 = vmatmul.mubr.msk.f32.vlgmr.msra.gmra.mrb[0].mxu1 %vm195_vm5, %v182_v41 }
  0x55   : > { %1075 = vmatpush3.bf16.msra.mxu0 %v1072_v21  ;;  %1079 = vmatpush3.bf16.msra.mxu1 %v1076_v26 }
  0x56   : > { %1026 = vmatprep.mubr.msk.f32.mxu0 %vm195_vm5, %v181_v38  ;;  %1033 = vmatprep.mubr.msk.f32.mxu1 %vm195_vm5, %v181_v38 }
  0x57   : > { %1082 = vmatprep.subr.msk.bf16.mxu0 %vm1415_vm7, %v1080_v42  ;;  %1088 = vmatprep.subr.msk.bf16.mxu1 %vm1415_vm7, %v1080_v42 }
  0x58   : > { %1027 = vmatmul.mubr.msk.f32.vlgmr.msra.gmra.mrb[2].mxu0 %vm195_vm5, %v182_v41  ;;  %1034 = vmatmul.mubr.msk.f32.vlgmr.msra.gmra.mrb[2].mxu1 %vm195_vm5, %v182_v41 }
  0x59   : > { %1085 = vmatpush3.bf16.msk.msra.mxu0 %vm1415_vm7, %v1080_v42  ;;  %1091 = vmatpush3.bf16.msk.msra.mxu1 %vm1415_vm7, %v1080_v42 }
  0x5a   : > { %1094 = vmatprep.subr.msk.bf16.mxu0 %vm1415_vm7, %v1080_v42  ;;  %1100 = vmatprep.subr.msk.bf16.mxu1 %vm1415_vm7, %v1080_v42 }
 0x127   : > { %v1014_v44 = vpop.f32.mrb[0].mxu0  ;;  %v1021_v45 = vpop.f32.mrb[0].mxu1 }
 0x128   : > { %v268_v46 = vpop.f32.mrb[1].mxu0  ;;  %v343_v47 = vpop.f32.mrb[1].mxu1 }
 0x129   : > { %1040 = vmatprep.mubr.msk.f32.mxu0 %vm195_vm5, %v268_v46  ;;  %1047 = vmatprep.mubr.msk.f32.mxu1 %vm195_vm5, %v343_v47 }
 0x12a   : > { %1041 = vmatmul.mubr.msk.f32.vlgmr.msra.gmra.mrb[4].mxu0 %vm195_vm5, %v1014_v44  ;;  %1048 = vmatmul.mubr.msk.f32.vlgmr.msra.gmra.mrb[4].mxu1 %vm195_vm5, %v1021_v45 }
 0x12b   : > { %1097 = vmatpush3.bf16.msk.msra.mxu0 %vm1415_vm7, %v1080_v42  ;;  %1103 = vmatpush3.bf16.msk.msra.mxu1 %vm1415_vm7, %v1080_v42  ;;  %v1028_v48 = vpop.f32.mrb[2].mxu0  ;;  %v1035_v49 = vpop.f32.mrb[2].mxu1 }
 0x12c   : > { %v418_v50 = vpop.f32.mrb[3].mxu0  ;;  %v493_v51 = vpop.f32.mrb[3].mxu1 }
 0x12d   : > { %1054 = vmatprep.mubr.msk.f32.mxu0 %vm195_vm5, %v418_v50  ;;  %1061 = vmatprep.mubr.msk.f32.mxu1 %vm195_vm5, %v493_v51 }
 0x12e   : > { %1055 = vmatmul.mubr.msk.f32.vlgmr.msra.gmra.mrb[6].mxu0 %vm195_vm5, %v1028_v48  ;;  %1062 = vmatmul.mubr.msk.f32.vlgmr.msra.gmra.mrb[6].mxu1 %vm195_vm5, %v1035_v49 }
 0x1fd   : > { %v1042_v52 = vpop.f32.mrb[4].mxu0  ;;  %v1049_v53 = vpop.f32.mrb[4].mxu1 }
 0x1fe   : > { %v827_v54 = vsub.f32 %v1042_v52, %v1390_v9  ;;  %v829_v55 = vsub.f32 %v1049_v53, %v1396_v14  ;;  %v574_v56 = vpop.f32.mrb[5].mxu0  ;;  %v655_v57 = vpop.f32.mrb[5].mxu1 }
 0x1ff   : > { %v826_v58 = vsub.f32 %v574_v56, %v1388_v8  ;;  %v828_v59 = vsub.f32 %v655_v57, %v1392_v10 }
 0x200   : > { %835 = vst.msk [vmem:[%s135_s25 + $0x8] sm:$0xff] %vm195_vm5, %v827_v54  ;;  %837 = vst.msk [vmem:[%s135_s25 + $0x18] sm:$0xff] %vm195_vm5, %v829_v55 }
 0x201   : > { %834 = vst.msk [vmem:[%s135_s25] sm:$0xff] %vm195_vm5, %v826_v58  ;;  %836 = vst.msk [vmem:[%s135_s25 + $0x10] sm:$0xff] %vm195_vm5, %v828_v59  ;;  %v1056_v60 = vpop.f32.mrb[6].mxu0  ;;  %v1063_v61 = vpop.f32.mrb[6].mxu1 }
 0x202   : > { %v831_v62 = vsub.f32 %v1056_v60, %v1400_v19  ;;  %v833_v63 = vsub.f32 %v1063_v61, %v1408_v23  ;;  %v736_v0 = vpop.f32.mrb[7].mxu0  ;;  %v817_v1 = vpop.f32.mrb[7].mxu1 }
 0x203   : > { %v830_v2 = vsub.f32 %v736_v0, %v1398_v18  ;;  %v832_v3 = vsub.f32 %v817_v1, %v1406_v22 }
 0x204   : > { %839 = vst.msk [vmem:[%s135_s25 + $0x28] sm:$0xff] %vm195_vm5, %v831_v62  ;;  %841 = vst.msk [vmem:[%s135_s25 + $0x38] sm:$0xff] %vm195_vm5, %v833_v63 }
 0x205   : > { %838 = vst.msk [vmem:[%s135_s25 + $0x20] sm:$0xff] %vm195_vm5, %v830_v2  ;;  %840 = vst.msk [vmem:[%s135_s25 + $0x30] sm:$0xff] %vm195_vm5, %v832_v3 }
 0x206   : > { %1203 = shalt.err (!%p1200_p2)
}
 0x207   : > { %s1204_s13 = scalar_lea.hbm %s1464_s29, 1024  ;;  %s1208_s20 = scalar_lea.hbm %s1517_s1, 2048 }
 0x208   : > { %p1205_p4 = scmp.ne.s32.totalorder %s1464_s29, %s1204_s13  ;;  %p1209_p9 = scmp.lt.u32.totalorder %s1464_s29, %s1517_s1 }
 0x209   : > { %p1210_p1 = scmp.lt.u32.totalorder %s1208_s20, %s1204_s13  ;;  %p1212_p6 = scmp.lt.u32.totalorder %s1204_s13, %s1464_s29 }
 0x20a   : > { %p1206_p5 = pnand %p1205_p4, %p1526_p11 }
 0x20b   : > { %p1211_p3 = por %p1210_p1, %p1209_p9 }
 0x20c   : > { %p1207_p7 = pneg %p1206_p5 }
 0x20d   : > { %p1213_p12 = por %p1212_p6, %p1211_p3 }
 0x20f   : > { %p1214_p13 = pnand %p1213_p12, %p1207_p7 }
 0x211   : > { %1217 = shalt.err (!%p1214_p13)
}
 0x212   : > { %s1262_s24 = smov 128   ;;  %s1263_s26 = smov 8  }
 0x213   : > { %1106 = dma.vmem_to_hbm [thread:$0]  (%p1526_p11), %s1466_s27, 1024, %s1464_s29, %s843_s2, %s1262_s24, %s1262_s24, %s1263_s26  }
 0x214 PF: > { %s872_s30 = sand.u32 1, %s1244_s6   ;;  %p1527_p8 = scmp.ne.s32.totalorder %s1522_s19, 0 }
 0x215   : > { %p1528_p10 = scmp.ge.s32.totalorder %s1256_s9, 2  ;;  %s873_s17 = scalar_lea.sflag [#allocation4], %s872_s30 }
 0x217   : > { %p1113_p0 = pnand %p1528_p10, %p1527_p8 }
 0x219   : > { %1239 = dma.done.wait (!%p1113_p0), %s873_s17, 1024  }
 0x21a   : > { %1241 = vsyncadd (!%p1113_p0), %s873_s17, 4294966272  ;;  %p14_p2 = scmp.ge.s32.totalorder %s1299_s12, 4   ;;  %s1529_s6 = smov %s1248_s7 }
 0x21b   : > { %s1530_s7 = smov %s1252_s8  ;;  %s1531_s8 = smov %s1311_s15 }
 0x21c   : > { %s1532_s9 = smov %s1299_s12  ;;  %16 = sbr.rel (!%p14_p2) target bundleno = 5 (0x5), region = 69 }
 0x223   :  { %878 = vsyncpa [#allocation3], 1 }
 0x224   :  { %880 = vsyncpa [#allocation3 + $0x1], 1 }
 0x225   :  { %881 = vsyncpa [#allocation4], 1 }
 0x226   :  { %883 = vsyncpa [#allocation4 + $0x1], 1 }

</bundles_post_ra>
